<compile_context>
chip_gen: v5e
topology: v5e:2x2
jax: 0.10.0
libtpu: 0.0.40
codegen_flags: <defaults>
</compile_context>

<pallas_src>
import functools

import jax
import jax.numpy as jnp
from jax.experimental import pallas as pl
from jax.experimental.pallas import tpu as pltpu


def _contrastive_loss_kernel(o1_ref, o2_ref, label_ref, out_ref, *,
                             margin, eps, batch, block_rows):
    o1 = o1_ref[...].astype(jnp.float32)                        # (TB, D)
    o2 = o2_ref[...].astype(jnp.float32)                        # (TB, D)
    label = label_ref[...].astype(jnp.float32)                  # (TB, 1)

    # F.pairwise_distance: ||x1 - x2 + eps||_2 along the feature axis, keepdim=True.
    diff = o1 - o2 + eps                                        # (TB, D)
    sq_dist = jnp.sum(diff * diff, axis=-1, keepdims=True)      # (TB, 1) == d^2
    dist = jnp.sqrt(sq_dist)                                    # (TB, 1)

    # (1 - label) * d^2 + label * clamp(margin - d, 0)^2
    #   == d^2 + label * (hinge^2 - d^2)     (one fewer VPU multiply per row)
    hinge = jnp.maximum(margin - dist, 0.0)
    row_loss = sq_dist + label * (hinge * hinge - sq_dist)      # (TB, 1)

    # Mask rows past the true batch size (uneven final block contains garbage);
    # jnp.where fully replaces, so NaN/Inf garbage cannot leak into the sum.
    row_ids = jax.lax.broadcasted_iota(jnp.int32, row_loss.shape, 0)
    valid = (pl.program_id(0) * block_rows + row_ids) < batch
    row_loss = jnp.where(valid, row_loss, 0.0)

    # Per-tile partial sum, written lane-dense (same value in all 128 lanes).
    tile_sum = jnp.sum(row_loss, axis=0, keepdims=True)         # (1, 1)
    out_ref[...] = jnp.broadcast_to(tile_sum, out_ref.shape)    # (1, 128)


def contrastive_loss(output1, output2, label, margin=2.0, eps=1e-6,
                     target_block_bytes=4 << 20):
    """Pallas TPU implementation of ContrastiveLoss.forward.

    output1, output2: (B, D) float arrays (f32 or bf16).
    label:            (B, 1) or (B,) array (0 = similar, 1 = dissimilar).
    Returns a scalar float32 loss.
    """
    B, D = output1.shape
    assert output2.shape == (B, D)
    label = jnp.asarray(label, jnp.float32).reshape(B, 1)

    itemsize = jnp.dtype(output1.dtype).itemsize
    sub = max(8, 32 // itemsize)           # sublane tile: 8 (f32) / 16 (bf16) / 32 (int8)

    # --- Tile-row selection: byte-budgeted, no padding of the inputs. ---
    if B <= sub:
        tb = B                             # single block equal to the full batch dim
    else:
        tb_budget = max(sub, (target_block_bytes // max(D * itemsize, 1)) // sub * sub)
        tb = min(tb_budget, (B // sub) * sub)
        tb = min(tb, 8192)                 # bound the lane-padded (TB, 1) label VMEM
        if B >= 2 * sub:
            # Guarantee >= 2 tiles so a "parallel" grid can shard over v7x's 2 TCs.
            half = -(-B // 2)
            tb = min(tb, ((half + sub - 1) // sub) * sub)
        tb = max(tb, sub)
    num_tiles = pl.cdiv(B, tb)

    # --- Explicit VMEM budget (double-buffered inputs + lane-padded label + out). ---
    vmem_bytes = (2 * 2 * tb * D * itemsize    # two inputs x 2 pipeline buffers
                  + 2 * tb * 128 * 4           # (TB, 1) label block pads to 128 lanes
                  + 2 * 128 * 4)               # (1, 128) partial-sum output
    vmem_limit = int(min(vmem_bytes + (4 << 20), 48 << 20))   # v7x-safe (64 MiB phys)

    kernel = functools.partial(
        _contrastive_loss_kernel,
        margin=float(margin), eps=float(eps), batch=B, block_rows=tb,
    )

    cost = pl.CostEstimate(
        flops=4 * B * D + 8 * B,
        transcendentals=B,                                   # one sqrt per row
        bytes_accessed=2 * B * D * itemsize + B * 4 + num_tiles * 128 * 4,
    )

    partials = pl.pallas_call(
        kernel,
        out_shape=jax.ShapeDtypeStruct((num_tiles, 128), jnp.float32),
        grid=(num_tiles,),
        in_specs=[
            pl.BlockSpec((tb, D), lambda i: (i, 0)),
            pl.BlockSpec((tb, D), lambda i: (i, 0)),
            pl.BlockSpec((tb, 1), lambda i: (i, 0)),
        ],
        out_specs=pl.BlockSpec((1, 128), lambda i: (i, 0)),
        compiler_params=pltpu.CompilerParams(
            dimension_semantics=("parallel",),
            vmem_limit_bytes=vmem_limit,
        ),
        cost_estimate=cost,
    )(output1, output2, label)

    # torch.mean over (B, 1): sum of per-tile partials (lane 0 of each tile) / B.
    return jnp.sum(partials[:, 0]) / B


if __name__ == "__main__":
    key = jax.random.PRNGKey(0)
    k1, k2, k3 = jax.random.split(key, 3)

    B, D = 8, 32
    output1 = jax.random.normal(k1, (B, D), dtype=jnp.float32)
    output2 = jax.random.normal(k2, (B, D), dtype=jnp.float32)
    label = jax.random.bernoulli(k3, p=0.5, shape=(B, 1)).astype(jnp.float32)

    loss = contrastive_loss(output1, output2, label, margin=2.0)
    loss = jax.block_until_ready(loss)

    # Pure-JAX reference check (same math as the PyTorch module).
    diff = output1 - output2 + 1e-6
    dist = jnp.sqrt(jnp.sum(diff * diff, axis=-1, keepdims=True))
    hinge = jnp.maximum(2.0 - dist, 0.0)
    ref = jnp.mean((1.0 - label) * dist ** 2 + label * hinge ** 2)
    assert jnp.allclose(loss, ref, rtol=1e-5, atol=1e-6), (loss, ref)

    print("KERNEL_OK")
</pallas_src>

<mosaic_0001>
module attributes {stable_mosaic.version = 11 : i64} {
  func.func @_contrastive_loss_kernel(%arg0: i32, %arg1: memref<8x32xf32, #tpu.memory_space<vmem>>, %arg2: memref<8x32xf32, #tpu.memory_space<vmem>>, %arg3: memref<8x1xf32, #tpu.memory_space<vmem>>, %arg4: memref<1x128xf32, #tpu.memory_space<vmem>>) attributes {dimension_semantics = [#tpu.dimension_semantics<parallel>], iteration_bounds = array<i64: 1>, scalar_prefetch = 0 : i64, scratch_operands = 0 : i64, tpu.core_type = #tpu.core_type<tc>, window_params = [{transform_indices = @transform_0, window_bounds = array<i64: 8, 32>}, {transform_indices = @transform_1, window_bounds = array<i64: 8, 32>}, {transform_indices = @transform_2, window_bounds = array<i64: 8, 1>}, {transform_indices = @transform_3, window_bounds = array<i64: 1, 128>}]} {
    %c0 = arith.constant 0 : index
    %c0_0 = arith.constant 0 : index
    %0 = vector.load %arg1[%c0, %c0_0] : memref<8x32xf32, #tpu.memory_space<vmem>>, vector<8x32xf32>
    %c0_1 = arith.constant 0 : index
    %c0_2 = arith.constant 0 : index
    %1 = vector.load %arg2[%c0_1, %c0_2] : memref<8x32xf32, #tpu.memory_space<vmem>>, vector<8x32xf32>
    %c0_3 = arith.constant 0 : index
    %c0_4 = arith.constant 0 : index
    %2 = vector.load %arg3[%c0_3, %c0_4] : memref<8x1xf32, #tpu.memory_space<vmem>>, vector<8x1xf32>
    %3 = arith.subf %0, %1 : vector<8x32xf32>
    %cst = arith.constant 9.99999997E-7 : f32
    %4 = vector.broadcast %cst : f32 to vector<8x32xf32>
    %5 = arith.addf %3, %4 : vector<8x32xf32>
    %6 = arith.mulf %5, %5 : vector<8x32xf32>
    %cst_5 = arith.constant dense<0.000000e+00> : vector<8xf32>
    %7 = vector.multi_reduction <add>, %6, %cst_5 [1] : vector<8x32xf32> to vector<8xf32>
    %8 = vector.shape_cast %7 : vector<8xf32> to vector<8x1xf32>
    %9 = math.sqrt %8 : vector<8x1xf32>
    %cst_6 = arith.constant 2.000000e+00 : f32
    %10 = vector.broadcast %cst_6 : f32 to vector<8x1xf32>
    %11 = arith.subf %10, %9 : vector<8x1xf32>
    %cst_7 = arith.constant 0.000000e+00 : f32
    %12 = vector.broadcast %cst_7 : f32 to vector<8x1xf32>
    %13 = arith.maximumf %11, %12 : vector<8x1xf32>
    %14 = arith.mulf %13, %13 : vector<8x1xf32>
    %15 = arith.subf %14, %8 : vector<8x1xf32>
    %16 = arith.mulf %2, %15 : vector<8x1xf32>
    %17 = arith.addf %8, %16 : vector<8x1xf32>
    %18 = tpu.iota {dimensions = array<i32: 0>} : vector<8x1xi32>
    %c8_i32 = arith.constant 8 : i32
    %19 = arith.muli %arg0, %c8_i32 : i32
    %20 = vector.broadcast %19 : i32 to vector<8x1xi32>
    %21 = arith.addi %20, %18 : vector<8x1xi32>
    %c8_i32_8 = arith.constant 8 : i32
    %22 = vector.broadcast %c8_i32_8 : i32 to vector<8x1xi32>
    %23 = arith.cmpi slt, %21, %22 : vector<8x1xi32>
    %cst_9 = arith.constant 0.000000e+00 : f32
    %24 = vector.broadcast %cst_9 : f32 to vector<8x1xf32>
    %25 = arith.select %23, %17, %24 : vector<8x1xi1>, vector<8x1xf32>
    %cst_10 = arith.constant dense<0.000000e+00> : vector<1xf32>
    %26 = vector.multi_reduction <add>, %25, %cst_10 [0] : vector<8x1xf32> to vector<1xf32>
    %27 = vector.shape_cast %26 : vector<1xf32> to vector<1x1xf32>
    %28 = vector.shape_cast %27 : vector<1x1xf32> to vector<1x1xf32>
    %29 = vector.broadcast %28 : vector<1x1xf32> to vector<1x128xf32>
    %c0_11 = arith.constant 0 : index
    %c0_12 = arith.constant 0 : index
    %30 = vector.load %arg4[%c0_11, %c0_12] : memref<1x128xf32, #tpu.memory_space<vmem>>, vector<1x128xf32>
    tpu.vector_store %arg4[%c0_11, %c0_12], %29 {strides = array<i32>} : memref<1x128xf32, #tpu.memory_space<vmem>>, vector<1x128xf32>,
    return
  }
  func.func @transform_0(%arg0: i32) -> (i32, i32) {
    %c0_i32 = arith.constant 0 : i32
    %c0_i32_0 = arith.constant 0 : i32
    return %arg0, %c0_i32 : i32, i32
  }
  func.func @transform_1(%arg0: i32) -> (i32, i32) {
    %c0_i32 = arith.constant 0 : i32
    %c0_i32_0 = arith.constant 0 : i32
    return %arg0, %c0_i32 : i32, i32
  }
  func.func @transform_2(%arg0: i32) -> (i32, i32) {
    %c0_i32 = arith.constant 0 : i32
    %c0_i32_0 = arith.constant 0 : i32
    return %arg0, %c0_i32 : i32, i32
  }
  func.func @transform_3(%arg0: i32) -> (i32, i32) {
    %c0_i32 = arith.constant 0 : i32
    %c0_i32_0 = arith.constant 0 : i32
    return %arg0, %c0_i32 : i32, i32
  }
}

</mosaic_0001>

<bundles_post_ra>
// kernel: tpu_custom_call.1
= control target key start
LH: loop header
LB: loop body
LE: loop exit
PB: predicated region body
PF: predicated region fallthrough
CT: control target
= control target key end

     0   :  { %8 = vsyncpa [#allocation3], 0  ;;  %s188_s0 = inlined_call_operand.vmem [shape: f32[8,32], index: 0, kind: input, shape index: {}]   ;;  %s189_s1 = inlined_call_operand.hbm [shape: f32[8,32], index: 1, kind: input, shape index: {}]   ;;  %s190_s2 = inlined_call_operand.vmem [shape: f32[8,1], index: 2, kind: input, shape index: {}]   ;;  %s191_s3 = inlined_call_operand.hbm [shape: f32[1,128], index: 3, kind: output, shape index: {}]  }
   0x1   :  { %9 = vsyncpa [#allocation4], 0  ;;  %s17_s14 = sshll.u32 %s189_s1, 4  ;;  %s153_s15 = smov [#allocation2]   ;;  %s18_s14 = int_to_ptr.hbm [resolvable:$true] %s17_s14 }
   0x2   :  { %s19_s16 = sshll.u32 %s153_s15, 4  ;;  %s20_s16 = int_to_ptr.vmem [resolvable:$true] %s19_s16 }
   0x3   :  { %22 = dma.hbm_to_vmem [thread:$0]  %s18_s14, 128, %s20_s16, [#allocation3]  }
   0x4   :  { %149 = dma.done.wait [#allocation3], 128  }
   0x5   :  { %150 = vsyncadd [#allocation3], 4294967168  ;;  %v29_v0 = vld [vmem:[%s188_s0] sm:$0xff]  ;;  %vm35_vm0 = vcmask 261120   ;;  %v154_v6 = vmov 0   ;;  %vm64_vm3 = vcmask 7168  }
   0x6   :  { %v30_v1 = vld [vmem:[#allocation2] sm:$0xff]  ;;  %98 = vset.pattern.permute.xlu0 %v154_v6  ;;  %s155_s19 = smov [#allocation5]   ;;  %s85_s23 = sshll.u32 %s191_s3, 4  ;;  %s86_s23 = int_to_ptr.hbm [resolvable:$true] %s85_s23 }
   0x7   :  { %v32_v2 = vsub.f32 %v29_v0, %v30_v1  ;;  %v31_v21 = vld [vmem:[%s190_s2] sm:$0xff]  ;;  %s83_s20 = sshll.u32 %s155_s19, 4  ;;  %s84_s20 = int_to_ptr.vmem [resolvable:$true] %s83_s20 }
   0x9   :  { %v33_v3 = vadd.f32 1e-06, %v32_v2 }
   0xb   :  { %v34_v4 = vmul.f32 %v33_v3, %v33_v3 }
   0xd   :  { %v36_v5 = vsel %vm35_vm0, %v34_v4, 0.0 }
   0xe   :  { %37 = vadd.xlane.f32.xlu0 %v36_v5 }
  0x81   :  { %v38_v7 = vpop.xlane.xlu0 %37 }
  0x82   :  { %99 = vrsqrt.f32 %v38_v7  ;;  %vm46_vm1 = vcmp.eq.f32.partialorder %v38_v7, inf  ;;  %v49_v15 = vand.u32 2147483648, %v38_v7  ;;  %vm48_vm2 = vcmp.eq.f32.partialorder %v38_v7, 0.0 }
  0x88   :  { %v100_v8 = vpop.eup %99 }
  0x89   :  { %v40_v9 = vmul.f32 %v100_v8, %v38_v7 }
  0x8b   :  { %v41_v10 = vmul.f32 %v100_v8, %v40_v9 }
  0x8d   :  { %v42_v11 = vmul.f32 0.5, %v41_v10 }
  0x8f   :  { %v43_v12 = vsub.f32 1.5, %v42_v11 }
  0x91   :  { %v44_v13 = vmul.f32 %v100_v8, %v43_v12 }
  0x93   :  { %v45_v14 = vmul.f32 %v44_v13, %v38_v7 }
  0x95   :  { %v47_v16 = vsel %vm46_vm1, %v38_v7, %v45_v14 }
  0x96   :  { %v50_v17 = vsel %vm48_vm2, %v49_v15, %v47_v16 }
  0x97   :  { %v51_v18 = vsub.f32 2.0, %v50_v17 }
  0x99   :  { %v52_v19 = vmax.f32 %v51_v18, 0.0 }
  0x9b   :  { %v53_v20 = vmul.f32 %v52_v19, %v52_v19 }
  0x9d   :  { %v54_v22 = vsub.f32 %v53_v20, %v38_v7 }
  0x9f   :  { %v55_v23 = vmul.f32 %v54_v22, %v31_v21 }
  0xa1   :  { %v56_v24 = vadd.f32 %v55_v23, %v38_v7 }
  0xa3   :  { %v65_v25 = vsel %vm64_vm3, %v56_v24, 0.0 }
  0xa4   :  { %v66_v26 = vrot.slane %v65_v25, 4 }
  0xa6   :  { %v67_v27 = vadd.f32 %v66_v26, %v65_v25 }
  0xa8   :  { %v68_v28 = vrot.slane %v67_v27, 2 }
  0xaa   :  { %v69_v29 = vadd.f32 %v68_v28, %v67_v27 }
  0xac   :  { %v70_v30 = vrot.slane %v69_v29, 1 }
  0xae   :  { %v71_v31 = vadd.f32 %v70_v30, %v69_v29 }
  0xb0   :  { %74 = vperm.xlu0 %98, %v71_v31  }
 0x122   :  { %v75_v32 = vpop.permute.xlu0 %74 }
 0x123   :  { %77 = vst [vmem:[#allocation5] sm:$0x1] %v75_v32 }
 0x124   :  { %88 = dma.vmem_to_hbm [thread:$0]  %s84_s20, 16, %s86_s23, [#allocation4]  }
 0x125   :  { %151 = dma.done.wait [#allocation4], 16  }
 0x126   :  { %152 = vsyncadd [#allocation4], 4294967280 }
 0x127   :  { %93 = vsyncpa [#allocation3], 1 }
 0x128   :  { %94 = vsyncpa [#allocation4], 1 }

</bundles_post_ra>
